<compile_context>
chip_gen: v6e
topology: v6e:2x2x1
jax: 0.10.0
libtpu: 0.0.40
codegen_flags: <defaults>
</compile_context>

<pallas_src>
import math

import jax
import jax.numpy as jnp
from jax.experimental import pallas as pl
from jax.experimental.pallas import tpu as pltpu


def _round_up(x, m):
    return ((x + m - 1) // m) * m


def linear_kernel_f32(x_ref, w_ref, b_ref, o_ref):
    # x_ref: (tm, tk), w_ref: (tk, tn), b_ref: (1, tn), o_ref: (tm, tn) f32
    # Output block is resident across the K axis -> accumulate into it directly.
    k = pl.program_id(2)

    @pl.when(k == 0)
    def _():
        o_ref[...] = jnp.zeros_like(o_ref)

    o_ref[...] += jnp.dot(x_ref[...], w_ref[...],
                          preferred_element_type=jnp.float32)

    @pl.when(k == pl.num_programs(2) - 1)
    def _():
        o_ref[...] += b_ref[...]


def linear_kernel_scratch(x_ref, w_ref, b_ref, o_ref, acc_ref):
    # Variant for non-f32 output dtypes: f32 accumulator scratch + final cast.
    k = pl.program_id(2)

    @pl.when(k == 0)
    def _():
        acc_ref[...] = jnp.zeros_like(acc_ref)

    acc_ref[...] += jnp.dot(x_ref[...], w_ref[...],
                            preferred_element_type=jnp.float32)

    @pl.when(k == pl.num_programs(2) - 1)
    def _():
        o_ref[...] = (acc_ref[...] + b_ref[...]).astype(o_ref.dtype)


def linear_regression_forward(x, weight, bias, *,
                              tm_max=512, tn_max=512, tk_max=2048,
                              vmem_tile_budget=40 * 1024 * 1024):
    """Flatten(x) @ weight.T + bias, matching nn.Flatten + nn.Linear.

    x      : (B, C, H, W) float32
    weight : (outputSize, inputSize) float32   (PyTorch Linear convention)
    bias   : (outputSize,) float32
    """
    B = x.shape[0]
    in_size = math.prod(x.shape[1:])
    out_size = weight.shape[0]
    itemsize = jnp.dtype(x.dtype).itemsize
    use_scratch = x.dtype != jnp.float32

    x_flat = x.reshape(B, in_size)  # glue: nn.Flatten (row-major, same as torch)

    # ---- Tile selection -----------------------------------------------------
    # M: whole batch in one tile when it fits -> weight streamed exactly once.
    if B <= tm_max:
        tm, Mp = B, B
    else:
        tm = tm_max                      # multiple of 8
        Mp = _round_up(B, tm)

    # N: skip padding for narrow outputs (pad to 128 would inflate the weight
    # the kernel streams by up to 16x); full-dim blocks are always legal.
    if out_size < 128:
        tn, Np = out_size, out_size
    else:
        Np = _round_up(out_size, 128)
        tn = min(tn_max, Np)             # multiple of 128
        Np = _round_up(out_size, tn)

    # K: always zero-padded to a tile multiple (correctness of the reduction).
    tk = min(tk_max, _round_up(in_size, 128))
    Kp = _round_up(in_size, tk)

    # VMEM budget guard (double-buffered inputs + resident output [+ scratch]).
    def vmem_bytes(tm_, tn_, tk_):
        b = 2 * (tm_ * tk_ + tk_ * tn_ + tm_ * tn_ + tn_) * itemsize
        if use_scratch:
            b += tm_ * tn_ * 4
        return b

    while vmem_bytes(tm, tn, tk) > vmem_tile_budget and tk > 512:
        tk = max(512, _round_up(tk // 2, 128))
        Kp = _round_up(in_size, tk)

    # Megacore: make sure the parallel grid has >=2 tiles when the shape allows
    # it (v7x has 2 TensorCores; a (1,1,K) grid leaves one idle).
    if (Mp // tm) * (Np // tn) == 1:
        if tn >= 256 and tn % 256 == 0:
            tn //= 2
        elif tm >= 16 and tm % 16 == 0:
            tm //= 2

    # ---- Padding (zeros; extra K contributes 0, extra M/N sliced off) -------
    if (Mp, Kp) != (B, in_size):
        x_flat = jnp.pad(x_flat, ((0, Mp - B), (0, Kp - in_size)))

    # One-time layout change to (K, N): standard MXU dot in the kernel, no
    # per-tile cross-lane transpose.
    w_t = weight.T
    if (Kp, Np) != (in_size, out_size):
        w_t = jnp.pad(w_t, ((0, Kp - in_size), (0, Np - out_size)))

    b2 = bias.reshape(1, out_size)
    if Np != out_size:
        b2 = jnp.pad(b2, ((0, 0), (0, Np - out_size)))

    grid = (Mp // tm, Np // tn, Kp // tk)
    grid_m, grid_n, _ = grid

    cost = pl.CostEstimate(
        flops=2 * Mp * Np * Kp,
        transcendentals=0,
        # x is re-read once per N tile, w once per M tile.
        bytes_accessed=itemsize * (grid_n * Mp * Kp + grid_m * Kp * Np
                                   + Mp * Np + Np),
    )

    kernel = linear_kernel_scratch if use_scratch else linear_kernel_f32
    scratch = [pltpu.VMEM((tm, tn), jnp.float32)] if use_scratch else []

    out_padded = pl.pallas_call(
        kernel,
        out_shape=jax.ShapeDtypeStruct((Mp, Np), x.dtype),
        grid_spec=pltpu.PrefetchScalarGridSpec(
            num_scalar_prefetch=0,
            grid=grid,
            in_specs=[
                pl.BlockSpec((tm, tk), lambda i, j, k: (i, k)),   # activations
                pl.BlockSpec((tk, tn), lambda i, j, k: (k, j)),   # weight (K, N)
                pl.BlockSpec((1, tn), lambda i, j, k: (0, j)),    # bias per N tile
            ],
            out_specs=pl.BlockSpec((tm, tn), lambda i, j, k: (i, j)),
            scratch_shapes=scratch,
        ),
        compiler_params=pltpu.CompilerParams(
            dimension_semantics=("parallel", "parallel", "arbitrary"),
            vmem_limit_bytes=48 * 1024 * 1024,
        ),
        cost_estimate=cost,
    )(x_flat, w_t, b2)

    if (Mp, Np) != (B, out_size):
        return out_padded[:B, :out_size]
    return out_padded


if __name__ == "__main__":
    # Small, deterministic example consistent with the module:
    # x: (2, 4, 16, 16)  -> inputSize = 4*16*16 = 1024, outputSize = 8
    key = jax.random.PRNGKey(0)
    kx, kw, kb = jax.random.split(key, 3)

    B, C, H, W = 2, 4, 16, 16
    input_size = C * H * W
    output_size = 8

    x = jax.random.normal(kx, (B, C, H, W), dtype=jnp.float32)
    # Deterministic init mimicking nn.Linear's uniform(-1/sqrt(in), 1/sqrt(in))
    bound = 1.0 / (input_size ** 0.5)
    weight = jax.random.uniform(kw, (output_size, input_size),
                                dtype=jnp.float32, minval=-bound, maxval=bound)
    bias = jax.random.uniform(kb, (output_size,),
                              dtype=jnp.float32, minval=-bound, maxval=bound)

    out = linear_regression_forward(x, weight, bias)
    out = jax.block_until_ready(out)

    # Reference check (pure JAX) for correctness.
    ref = x.reshape(B, -1) @ weight.T + bias
    assert out.shape == (B, output_size)
    assert jnp.allclose(out, ref, atol=1e-5, rtol=1e-5)

    print("KERNEL_OK")
</pallas_src>

<mosaic_0001>
module attributes {stable_mosaic.version = 11 : i64} {
  func.func @linear_kernel_f32(%arg0: i32, %arg1: i32, %arg2: i32, %arg3: memref<2x1024xf32, #tpu.memory_space<vmem>>, %arg4: memref<1024x8xf32, #tpu.memory_space<vmem>>, %arg5: memref<1x8xf32, #tpu.memory_space<vmem>>, %arg6: memref<2x8xf32, #tpu.memory_space<vmem>>) attributes {dimension_semantics = [#tpu.dimension_semantics<parallel>, #tpu.dimension_semantics<parallel>, #tpu.dimension_semantics<arbitrary>], iteration_bounds = array<i64: 1, 1, 1>, scalar_prefetch = 0 : i64, scratch_operands = 0 : i64, tpu.core_type = #tpu.core_type<tc>, window_params = [{transform_indices = @transform_0, window_bounds = array<i64: 2, 1024>}, {transform_indices = @transform_1, window_bounds = array<i64: 1024, 8>}, {transform_indices = @transform_2, window_bounds = array<i64: 1, 8>}, {transform_indices = @transform_3, window_bounds = array<i64: 2, 8>}]} {
    %c0_i32 = arith.constant 0 : i32
    %0 = arith.cmpi eq, %arg2, %c0_i32 : i32
    %1 = arith.extui %0 : i1 to i32
    %c0_i32_0 = arith.constant 0 : i32
    %2 = arith.cmpi ne, %1, %c0_i32_0 : i32
    scf.if %2 {
      %cst_10 = arith.constant 0.000000e+00 : f32
      %12 = vector.broadcast %cst_10 : f32 to vector<2x8xf32>
      %c0_11 = arith.constant 0 : index
      %c0_12 = arith.constant 0 : index
      %13 = vector.load %arg6[%c0_11, %c0_12] : memref<2x8xf32, #tpu.memory_space<vmem>>, vector<2x8xf32>
      tpu.vector_store %arg6[%c0_11, %c0_12], %12 {strides = array<i32>} : memref<2x8xf32, #tpu.memory_space<vmem>>, vector<2x8xf32>,
    } else {
    }
    %c0 = arith.constant 0 : index
    %c0_1 = arith.constant 0 : index
    %3 = vector.load %arg6[%c0, %c0_1] : memref<2x8xf32, #tpu.memory_space<vmem>>, vector<2x8xf32>
    %c0_2 = arith.constant 0 : index
    %c0_3 = arith.constant 0 : index
    %4 = vector.load %arg3[%c0_2, %c0_3] : memref<2x1024xf32, #tpu.memory_space<vmem>>, vector<2x1024xf32>
    %c0_4 = arith.constant 0 : index
    %c0_5 = arith.constant 0 : index
    %5 = vector.load %arg4[%c0_4, %c0_5] : memref<1024x8xf32, #tpu.memory_space<vmem>>, vector<1024x8xf32>
    %cst = arith.constant dense<0.000000e+00> : vector<2x8xf32>
    %6 = tpu.matmul %4, %5, %cst {dimension_numbers = #tpu.dot_dimension_numbers<[1], [0], [0], [1], [0, 0, 1, 1], [], []>} : vector<2x1024xf32>, vector<1024x8xf32>, vector<2x8xf32> -> vector<2x8xf32>
    %7 = arith.addf %3, %6 : vector<2x8xf32>
    %c0_6 = arith.constant 0 : index
    %c0_7 = arith.constant 0 : index
    %8 = vector.load %arg6[%c0_6, %c0_7] : memref<2x8xf32, #tpu.memory_space<vmem>>, vector<2x8xf32>
    tpu.vector_store %arg6[%c0_6, %c0_7], %7 {strides = array<i32>} : memref<2x8xf32, #tpu.memory_space<vmem>>, vector<2x8xf32>,
    %c0_i32_8 = arith.constant 0 : i32
    %9 = arith.cmpi eq, %arg2, %c0_i32_8 : i32
    %10 = arith.extui %9 : i1 to i32
    %c0_i32_9 = arith.constant 0 : i32
    %11 = arith.cmpi ne, %10, %c0_i32_9 : i32
    scf.if %11 {
      %c0_10 = arith.constant 0 : index
      %c0_11 = arith.constant 0 : index
      %12 = vector.load %arg6[%c0_10, %c0_11] : memref<2x8xf32, #tpu.memory_space<vmem>>, vector<2x8xf32>
      %c0_12 = arith.constant 0 : index
      %c0_13 = arith.constant 0 : index
      %13 = vector.load %arg5[%c0_12, %c0_13] : memref<1x8xf32, #tpu.memory_space<vmem>>, vector<1x8xf32>
      %14 = vector.broadcast %13 : vector<1x8xf32> to vector<2x8xf32>
      %15 = arith.addf %12, %14 : vector<2x8xf32>
      %c0_14 = arith.constant 0 : index
      %c0_15 = arith.constant 0 : index
      %16 = vector.load %arg6[%c0_14, %c0_15] : memref<2x8xf32, #tpu.memory_space<vmem>>, vector<2x8xf32>
      tpu.vector_store %arg6[%c0_14, %c0_15], %15 {strides = array<i32>} : memref<2x8xf32, #tpu.memory_space<vmem>>, vector<2x8xf32>,
    } else {
    }
    return
  }
  func.func @transform_0(%arg0: i32, %arg1: i32, %arg2: i32) -> (i32, i32) {
    %c0_i32 = arith.constant 0 : i32
    return %arg0, %arg2 : i32, i32
  }
  func.func @transform_1(%arg0: i32, %arg1: i32, %arg2: i32) -> (i32, i32) {
    %c0_i32 = arith.constant 0 : i32
    return %arg2, %arg1 : i32, i32
  }
  func.func @transform_2(%arg0: i32, %arg1: i32, %arg2: i32) -> (i32, i32) {
    %c0_i32 = arith.constant 0 : i32
    %c0_i32_0 = arith.constant 0 : i32
    return %c0_i32, %arg1 : i32, i32
  }
  func.func @transform_3(%arg0: i32, %arg1: i32, %arg2: i32) -> (i32, i32) {
    %c0_i32 = arith.constant 0 : i32
    return %arg0, %arg1 : i32, i32
  }
}

</mosaic_0001>

<bundles_post_ra>
// kernel: tpu_custom_call.1
= control target key start
LH: loop header
LB: loop body
LE: loop exit
PB: predicated region body
PF: predicated region fallthrough
CT: control target
= control target key end

     0   :  { %v674_v30 = vmov 1983009808   ;;  %v158_v32 = vlaneseq  ;;  %s1102_s0 = inlined_call_operand.vmem [shape: f32[2,1024], index: 0, kind: input, shape index: {}]   ;;  %s1103_s1 = inlined_call_operand.vmem [shape: f32[1024,8], index: 1, kind: input, shape index: {}]   ;;  %s1104_s2 = inlined_call_operand.vmem [shape: f32[1,8], index: 2, kind: input, shape index: {}]   ;;  %s1105_s3 = inlined_call_operand.hbm [shape: f32[2,8], index: 3, kind: output, shape index: {}]  }
   0x1   :  { %v55_v0 = vld [vmem:[%s1103_s1 + $0xf8] sm:$0xff]  ;;  %v54_v4 = vld [vmem:[%s1103_s1 + $0xf0] sm:$0xff]  ;;  %v53_v8 = vld [vmem:[%s1103_s1 + $0xe8] sm:$0xff]  ;;  %v156_v31 = vunpack.c.l.s4 %v674_v30 }
   0x2   :  { %v87_v1 = vld [vmem:[%s1103_s1 + $0x1f8] sm:$0xff]  ;;  %507 = vmatprep.subr.mxu0 %v55_v0  ;;  %v86_v5 = vld [vmem:[%s1103_s1 + $0x1f0] sm:$0xff]  ;;  %v85_v9 = vld [vmem:[%s1103_s1 + $0x1e8] sm:$0xff]  ;;  %v159_v42 = vshrl.u32 %v158_v32, 7 }
   0x3   :  { %v39_v2 = vld [vmem:[%s1103_s1 + $0x78] sm:$0xff]  ;;  %542 = vmatprep.subr.mxu1 %v87_v1  ;;  %v38_v6 = vld [vmem:[%s1103_s1 + $0x70] sm:$0xff]  ;;  %v37_v10 = vld [vmem:[%s1103_s1 + $0x68] sm:$0xff]  ;;  %v157_v41 = vunpack.c.0.s8 %v156_v31 }
   0x4   :  { %v71_v3 = vld [vmem:[%s1103_s1 + $0x178] sm:$0xff]  ;;  %508 = vmatpush3.msra.mxu0 %v39_v2  ;;  %v70_v7 = vld [vmem:[%s1103_s1 + $0x170] sm:$0xff]  ;;  %v69_v11 = vld [vmem:[%s1103_s1 + $0x168] sm:$0xff] }
   0x5   :  { %543 = vmatpush3.msra.mxu1 %v71_v3  ;;  %509 = vmatprep.subr.mxu0 %v54_v4  ;;  %v52_v12 = vld [vmem:[%s1103_s1 + $0xe0] sm:$0xff]  ;;  %v51_v16 = vld [vmem:[%s1103_s1 + $0xd8] sm:$0xff]  ;;  %v50_v20 = vld [vmem:[%s1103_s1 + $0xd0] sm:$0xff]  ;;  %v835_v51 = vsub.s32 %v157_v41, %v159_v42 }
   0x6   :  { %544 = vmatprep.subr.mxu1 %v86_v5  ;;  %510 = vmatpush3.msra.mxu0 %v38_v6  ;;  %v84_v13 = vld [vmem:[%s1103_s1 + $0x1e0] sm:$0xff]  ;;  %v83_v17 = vld [vmem:[%s1103_s1 + $0x1d8] sm:$0xff]  ;;  %v82_v21 = vld [vmem:[%s1103_s1 + $0x1d0] sm:$0xff] }
   0x7   :  { %545 = vmatpush3.msra.mxu1 %v70_v7  ;;  %511 = vmatprep.subr.mxu0 %v53_v8  ;;  %v36_v14 = vld [vmem:[%s1103_s1 + $0x60] sm:$0xff]  ;;  %v35_v18 = vld [vmem:[%s1103_s1 + $0x58] sm:$0xff]  ;;  %v34_v22 = vld [vmem:[%s1103_s1 + $0x50] sm:$0xff] }
   0x8   :  { %546 = vmatprep.subr.mxu1 %v85_v9  ;;  %v68_v15 = vld [vmem:[%s1103_s1 + $0x160] sm:$0xff]  ;;  %512 = vmatpush3.msra.mxu0 %v37_v10  ;;  %v67_v19 = vld [vmem:[%s1103_s1 + $0x158] sm:$0xff]  ;;  %v66_v23 = vld [vmem:[%s1103_s1 + $0x150] sm:$0xff] }
   0x9   :  { %547 = vmatpush3.msra.mxu1 %v69_v11  ;;  %513 = vmatprep.subr.mxu0 %v52_v12  ;;  %v49_v24 = vld [vmem:[%s1103_s1 + $0xc8] sm:$0xff]  ;;  %v48_v28 = vld [vmem:[%s1103_s1 + $0xc0] sm:$0xff]  ;;  %v47_v35 = vld [vmem:[%s1103_s1 + $0xb8] sm:$0xff] }
   0xa   :  { %548 = vmatprep.subr.mxu1 %v84_v13  ;;  %514 = vmatpush3.msra.mxu0 %v36_v14  ;;  %v81_v25 = vld [vmem:[%s1103_s1 + $0x1c8] sm:$0xff]  ;;  %v80_v29 = vld [vmem:[%s1103_s1 + $0x1c0] sm:$0xff]  ;;  %v79_v36 = vld [vmem:[%s1103_s1 + $0x1b8] sm:$0xff] }
   0xb   :  { %549 = vmatpush3.msra.mxu1 %v68_v15  ;;  %515 = vmatprep.subr.mxu0 %v51_v16  ;;  %v33_v26 = vld [vmem:[%s1103_s1 + $0x48] sm:$0xff]  ;;  %v32_v33 = vld [vmem:[%s1103_s1 + $0x40] sm:$0xff]  ;;  %v31_v37 = vld [vmem:[%s1103_s1 + $0x38] sm:$0xff] }
   0xc   :  { %550 = vmatprep.subr.mxu1 %v83_v17  ;;  %516 = vmatpush3.msra.mxu0 %v35_v18  ;;  %v65_v27 = vld [vmem:[%s1103_s1 + $0x148] sm:$0xff]  ;;  %v64_v34 = vld [vmem:[%s1103_s1 + $0x140] sm:$0xff]  ;;  %v63_v38 = vld [vmem:[%s1103_s1 + $0x138] sm:$0xff] }
   0xd   :  { %551 = vmatpush3.msra.mxu1 %v67_v19  ;;  %517 = vmatprep.subr.mxu0 %v50_v20  ;;  %v46_v39 = vld [vmem:[%s1103_s1 + $0xb0] sm:$0xff]  ;;  %v45_v45 = vld [vmem:[%s1103_s1 + $0xa8] sm:$0xff]  ;;  %v44_v49 = vld [vmem:[%s1103_s1 + $0xa0] sm:$0xff] }
   0xe   :  { %552 = vmatprep.subr.mxu1 %v82_v21  ;;  %518 = vmatpush3.msra.mxu0 %v34_v22  ;;  %v78_v40 = vld [vmem:[%s1103_s1 + $0x1b0] sm:$0xff]  ;;  %v77_v46 = vld [vmem:[%s1103_s1 + $0x1a8] sm:$0xff]  ;;  %v76_v50 = vld [vmem:[%s1103_s1 + $0x1a0] sm:$0xff] }
   0xf   :  { %553 = vmatpush3.msra.mxu1 %v66_v23  ;;  %519 = vmatprep.subr.mxu0 %v49_v24  ;;  %v30_v43 = vld [vmem:[%s1103_s1 + $0x30] sm:$0xff]  ;;  %v29_v47 = vld [vmem:[%s1103_s1 + $0x28] sm:$0xff]  ;;  %v28_v52 = vld [vmem:[%s1103_s1 + $0x20] sm:$0xff] }
  0x10   :  { %554 = vmatprep.subr.mxu1 %v81_v25  ;;  %520 = vmatpush3.msra.mxu0 %v33_v26  ;;  %v62_v44 = vld [vmem:[%s1103_s1 + $0x130] sm:$0xff]  ;;  %v61_v48 = vld [vmem:[%s1103_s1 + $0x128] sm:$0xff]  ;;  %v60_v53 = vld [vmem:[%s1103_s1 + $0x120] sm:$0xff] }
  0x11   :  { %555 = vmatpush3.msra.mxu1 %v65_v27  ;;  %521 = vmatprep.subr.mxu0 %v48_v28  ;;  %v22_v54 = vld [vmem:[%s1102_s0] sm:$0xff]  ;;  %v43_v55 = vld [vmem:[%s1103_s1 + $0x98] sm:$0xff]  ;;  %v42_v60 = vld [vmem:[%s1103_s1 + $0x90] sm:$0xff] }
  0x12   :  { %556 = vmatprep.subr.mxu1 %v80_v29  ;;  %522 = vmatpush3.msra.mxu0 %v32_v33  ;;  %v75_v56 = vld [vmem:[%s1103_s1 + $0x198] sm:$0xff]  ;;  %v154_v57 = vcombine.high %v22_v54, %v22_v54  ;;  %v74_v61 = vld [vmem:[%s1103_s1 + $0x190] sm:$0xff]  ;;  %v161_v62 = vrot.slane %v22_v54, %v835_v51  ;;  %v41_v2 = vld [vmem:[%s1103_s1 + $0x88] sm:$0xff] }
  0x13   :  { %557 = vmatpush3.msra.mxu1 %v64_v34  ;;  %523 = vmatprep.subr.mxu0 %v47_v35  ;;  %v27_v58 = vld [vmem:[%s1103_s1 + $0x18] sm:$0xff]  ;;  %v26_v63 = vld [vmem:[%s1103_s1 + $0x10] sm:$0xff]  ;;  %v73_v3 = vld [vmem:[%s1103_s1 + $0x188] sm:$0xff] }
  0x14   :  { %558 = vmatprep.subr.mxu1 %v79_v36  ;;  %524 = vmatpush3.msra.mxu0 %v31_v37  ;;  %v59_v59 = vld [vmem:[%s1103_s1 + $0x118] sm:$0xff]  ;;  %v58_v0 = vld [vmem:[%s1103_s1 + $0x110] sm:$0xff]  ;;  %v168_v1 = vrot.slane %v154_v57, %v835_v51  ;;  %v25_v4 = vld [vmem:[%s1103_s1 + $0x8] sm:$0xff]  ;;  %v169_v8 = vcombine.high %v161_v62, %v161_v62 }
  0x15   :  { %559 = vmatpush3.msra.mxu1 %v63_v38  ;;  %525 = vmatprep.subr.mxu0 %v46_v39  ;;  %v57_v5 = vld [vmem:[%s1103_s1 + $0x108] sm:$0xff]  ;;  %v40_v6 = vld [vmem:[%s1103_s1 + $0x80] sm:$0xff]  ;;  %v119_v12 = vld [vmem:[%s1103_s1 + $0x2f8] sm:$0xff] }
  0x16   :  { %560 = vmatprep.subr.mxu1 %v78_v40  ;;  %526 = vmatpush3.msra.mxu0 %v30_v43  ;;  %v72_v7 = vld [vmem:[%s1103_s1 + $0x180] sm:$0xff]  ;;  %v170_v10 = vcombine.high %v168_v1, %v168_v1  ;;  %v151_v13 = vld [vmem:[%s1103_s1 + $0x3f8] sm:$0xff]  ;;  %v118_v16 = vld [vmem:[%s1103_s1 + $0x2f0] sm:$0xff] }
  0x17   :  { %561 = vmatpush3.msra.mxu1 %v62_v44  ;;  %527 = vmatprep.subr.mxu0 %v45_v45  ;;  %v24_v9 = vld [vmem:[%s1103_s1] sm:$0xff]  ;;  %v103_v14 = vld [vmem:[%s1103_s1 + $0x278] sm:$0xff]  ;;  %v150_v17 = vld [vmem:[%s1103_s1 + $0x3f0] sm:$0xff] }
  0x18   :  { %562 = vmatprep.subr.mxu1 %v77_v46  ;;  %528 = vmatpush3.msra.mxu0 %v29_v47  ;;  %v56_v11 = vld [vmem:[%s1103_s1 + $0x100] sm:$0xff]  ;;  %v135_v15 = vld [vmem:[%s1103_s1 + $0x378] sm:$0xff]  ;;  %v102_v18 = vld [vmem:[%s1103_s1 + $0x270] sm:$0xff] }
  0x19   :  { %563 = vmatpush3.msra.mxu1 %v61_v48  ;;  %529 = vmatprep.subr.mxu0 %v44_v49  ;;  %v134_v19 = vld [vmem:[%s1103_s1 + $0x370] sm:$0xff]  ;;  %v117_v20 = vld [vmem:[%s1103_s1 + $0x2e8] sm:$0xff]  ;;  %v116_v24 = vld [vmem:[%s1103_s1 + $0x2e0] sm:$0xff] }
  0x1a   :  { %564 = vmatprep.subr.mxu1 %v76_v50  ;;  %530 = vmatpush3.msra.mxu0 %v28_v52  ;;  %v149_v21 = vld [vmem:[%s1103_s1 + $0x3e8] sm:$0xff]  ;;  %v148_v25 = vld [vmem:[%s1103_s1 + $0x3e0] sm:$0xff]  ;;  %v115_v28 = vld [vmem:[%s1103_s1 + $0x2d8] sm:$0xff] }
  0x1b   :  { %565 = vmatpush3.msra.mxu1 %v60_v53  ;;  %531 = vmatprep.subr.mxu0 %v43_v55  ;;  %v101_v22 = vld [vmem:[%s1103_s1 + $0x268] sm:$0xff]  ;;  %v100_v26 = vld [vmem:[%s1103_s1 + $0x260] sm:$0xff]  ;;  %v147_v29 = vld [vmem:[%s1103_s1 + $0x3d8] sm:$0xff] }
  0x1c   :  { %566 = vmatprep.subr.mxu1 %v75_v56  ;;  %532 = vmatpush3.msra.mxu0 %v27_v58  ;;  %v133_v23 = vld [vmem:[%s1103_s1 + $0x368] sm:$0xff]  ;;  %v132_v27 = vld [vmem:[%s1103_s1 + $0x360] sm:$0xff]  ;;  %v99_v30 = vld [vmem:[%s1103_s1 + $0x258] sm:$0xff] }
  0x1d   :  { %567 = vmatpush3.msra.mxu1 %v59_v59  ;;  %533 = vmatprep.subr.mxu0 %v42_v60  ;;  %v131_v31 = vld [vmem:[%s1103_s1 + $0x358] sm:$0xff]  ;;  %v114_v32 = vld [vmem:[%s1103_s1 + $0x2d0] sm:$0xff] }
  0x1e   :  { %568 = vmatprep.subr.mxu1 %v74_v61  ;;  %534 = vmatpush3.msra.mxu0 %v26_v63  ;;  %v146_v33 = vld [vmem:[%s1103_s1 + $0x3d0] sm:$0xff] }
  0x1f   :  { %569 = vmatpush3.msra.mxu1 %v58_v0  ;;  %535 = vmatprep.subr.mxu0 %v41_v2  ;;  %v98_v34 = vld [vmem:[%s1103_s1 + $0x250] sm:$0xff] }
  0x20   :  { %570 = vmatprep.subr.mxu1 %v73_v3  ;;  %536 = vmatpush3.msra.mxu0 %v25_v4  ;;  %v130_v35 = vld [vmem:[%s1103_s1 + $0x350] sm:$0xff] }
  0x21   :  { %571 = vmatpush3.msra.mxu1 %v57_v5  ;;  %537 = vmatprep.subr.mxu0 %v40_v6 }
  0x22   :  { %572 = vmatprep.subr.mxu1 %v72_v7  ;;  %538 = vmatpush3.msra.mxu0 %v24_v9 }
  0x23   :  { %260 = vmatprep.mubr.f32.mxu0 %v169_v8  ;;  %573 = vmatpush3.msra.mxu1 %v56_v11 }
  0x24   :  { %330 = vmatprep.mubr.f32.mxu1 %v170_v10  ;;  %261 = vmatmul.mubr.f32.vlgmr.msra.gmra.mxu0 %v161_v62 }
  0x25   :  { %331 = vmatmul.mubr.f32.vlgmr.msra.gmra.mxu1 %v168_v1  ;;  %577 = vmatprep.subr.mxu0 %v119_v12 }
  0x26   :  { %612 = vmatprep.subr.mxu1 %v151_v13  ;;  %578 = vmatpush3.msra.mxu0 %v103_v14 }
  0x27   :  { %613 = vmatpush3.msra.mxu1 %v135_v15  ;;  %579 = vmatprep.subr.mxu0 %v118_v16 }
  0x28   :  { %614 = vmatprep.subr.mxu1 %v150_v17  ;;  %580 = vmatpush3.msra.mxu0 %v102_v18 }
  0x29   :  { %615 = vmatpush3.msra.mxu1 %v134_v19  ;;  %581 = vmatprep.subr.mxu0 %v117_v20 }
  0x2a   :  { %616 = vmatprep.subr.mxu1 %v149_v21  ;;  %582 = vmatpush3.msra.mxu0 %v101_v22 }
  0x2b   :  { %617 = vmatpush3.msra.mxu1 %v133_v23  ;;  %583 = vmatprep.subr.mxu0 %v116_v24 }
  0x2c   :  { %618 = vmatprep.subr.mxu1 %v148_v25  ;;  %584 = vmatpush3.msra.mxu0 %v100_v26 }
  0x2d   :  { %619 = vmatpush3.msra.mxu1 %v132_v27  ;;  %585 = vmatprep.subr.mxu0 %v115_v28 }
  0x2e   :  { %620 = vmatprep.subr.mxu1 %v147_v29 }
  0x2f   :  { %8 = vsyncpa [#allocation3], 0  ;;  %586 = vmatpush3.msra.mxu0 %v99_v30  ;;  %621 = vmatpush3.msra.mxu1 %v131_v31  ;;  %v113_v36 = vld [vmem:[%s1103_s1 + $0x2c8] sm:$0xff]  ;;  %v112_v40 = vld [vmem:[%s1103_s1 + $0x2c0] sm:$0xff]  ;;  %vm19_vm0 = vcmask 58368   ;;  %v675_v18 = vmov 0.0  }
  0x30   :  { %v145_v37 = vld [vmem:[%s1103_s1 + $0x3c8] sm:$0xff]  ;;  %587 = vmatprep.subr.mxu0 %v114_v32  ;;  %622 = vmatprep.subr.mxu1 %v146_v33  ;;  %v144_v41 = vld [vmem:[%s1103_s1 + $0x3c0] sm:$0xff]  ;;  %v111_v44 = vld [vmem:[%s1103_s1 + $0x2b8] sm:$0xff]  ;;  %20 = vst.msk [vmem:[#allocation2] sm:$0x3] %vm19_vm0, %v675_v18  ;;  %s676_s28 = smov [#allocation2]  }
  0x31   :  { %v97_v38 = vld [vmem:[%s1103_s1 + $0x248] sm:$0xff]  ;;  %588 = vmatpush3.msra.mxu0 %v98_v34  ;;  %623 = vmatpush3.msra.mxu1 %v130_v35  ;;  %v96_v42 = vld [vmem:[%s1103_s1 + $0x240] sm:$0xff]  ;;  %v143_v45 = vld [vmem:[%s1103_s1 + $0x3b8] sm:$0xff]  ;;  %s498_s29 = sshll.u32 %s676_s28, 4  ;;  %s499_s29 = int_to_ptr.vmem [resolvable:$true] %s498_s29 }
  0x32   :  { %v129_v39 = vld [vmem:[%s1103_s1 + $0x348] sm:$0xff]  ;;  %589 = vmatprep.subr.mxu0 %v113_v36  ;;  %624 = vmatprep.subr.mxu1 %v145_v37  ;;  %v128_v43 = vld [vmem:[%s1103_s1 + $0x340] sm:$0xff]  ;;  %v95_v46 = vld [vmem:[%s1103_s1 + $0x238] sm:$0xff]  ;;  %s652_s30 = scalar_lea.vmem %s499_s29, 32  ;;  %p657_p1 = scmp.lt.s32.totalorder %s499_s29, %s499_s29 }
  0x33   :  { %590 = vmatpush3.msra.mxu0 %v97_v38  ;;  %625 = vmatpush3.msra.mxu1 %v129_v39  ;;  %v127_v47 = vld [vmem:[%s1103_s1 + $0x338] sm:$0xff]  ;;  %v110_v48 = vld [vmem:[%s1103_s1 + $0x2b0] sm:$0xff]  ;;  %v109_v53 = vld [vmem:[%s1103_s1 + $0x2a8] sm:$0xff]  ;;  %p653_p0 = scmp.ne.s32.totalorder %s499_s29, %s652_s30  ;;  %p658_p2 = scmp.lt.s32.totalorder %s652_s30, %s652_s30 }
  0x34   :  { %591 = vmatprep.subr.mxu0 %v112_v40  ;;  %626 = vmatprep.subr.mxu1 %v144_v41  ;;  %v142_v49 = vld [vmem:[%s1103_s1 + $0x3b0] sm:$0xff]  ;;  %v141_v54 = vld [vmem:[%s1103_s1 + $0x3a8] sm:$0xff]  ;;  %v108_v58 = vld [vmem:[%s1103_s1 + $0x2a0] sm:$0xff] }
  0x35   :  { %592 = vmatpush3.msra.mxu0 %v96_v42  ;;  %627 = vmatpush3.msra.mxu1 %v128_v43  ;;  %v94_v50 = vld [vmem:[%s1103_s1 + $0x230] sm:$0xff]  ;;  %v23_v55 = vld [vmem:[%s1102_s0 + $0x8] sm:$0xff]  ;;  %v140_v59 = vld [vmem:[%s1103_s1 + $0x3a0] sm:$0xff]  ;;  %p659_p3 = por %p658_p2, %p657_p1 }
  0x36   :  { %593 = vmatprep.subr.mxu0 %v111_v44  ;;  %628 = vmatprep.subr.mxu1 %v143_v45  ;;  %v126_v52 = vld [vmem:[%s1103_s1 + $0x330] sm:$0xff]  ;;  %v93_v56 = vld [vmem:[%s1103_s1 + $0x228] sm:$0xff]  ;;  %v92_v60 = vld [vmem:[%s1103_s1 + $0x220] sm:$0xff]  ;;  %v171_v62 = vcombine.high %v23_v55, %v23_v55  ;;  %v178_v5 = vrot.slane %v23_v55, %v835_v51 }
  0x37   :  { %594 = vmatpush3.msra.mxu0 %v95_v46  ;;  %629 = vmatpush3.msra.mxu1 %v127_v47  ;;  %v125_v57 = vld [vmem:[%s1103_s1 + $0x328] sm:$0xff]  ;;  %v124_v61 = vld [vmem:[%s1103_s1 + $0x320] sm:$0xff]  ;;  %v107_v63 = vld [vmem:[%s1103_s1 + $0x298] sm:$0xff]  ;;  %p660_p4 = pnand %p659_p3, %p653_p0 }
  0x38   :  { %595 = vmatprep.subr.mxu0 %v110_v48  ;;  %630 = vmatprep.subr.mxu1 %v142_v49  ;;  %v139_v0 = vld [vmem:[%s1103_s1 + $0x398] sm:$0xff]  ;;  %v106_v3 = vld [vmem:[%s1103_s1 + $0x290] sm:$0xff]  ;;  %v185_v8 = vrot.slane %v171_v62, %v835_v51  ;;  %v105_v9 = vld [vmem:[%s1103_s1 + $0x288] sm:$0xff]  ;;  %v186_v14 = vcombine.high %v178_v5, %v178_v5 }
  0x39   :  { %596 = vmatpush3.msra.mxu0 %v94_v50  ;;  %631 = vmatpush3.msra.mxu1 %v126_v52  ;;  %v91_v1 = vld [vmem:[%s1103_s1 + $0x218] sm:$0xff]  ;;  %v138_v4 = vld [vmem:[%s1103_s1 + $0x390] sm:$0xff]  ;;  %v137_v10 = vld [vmem:[%s1103_s1 + $0x388] sm:$0xff] }
  0x3a   :  { %597 = vmatprep.subr.mxu0 %v109_v53  ;;  %632 = vmatprep.subr.mxu1 %v141_v54  ;;  %v123_v2 = vld [vmem:[%s1103_s1 + $0x318] sm:$0xff]  ;;  %v90_v6 = vld [vmem:[%s1103_s1 + $0x210] sm:$0xff]  ;;  %v89_v11 = vld [vmem:[%s1103_s1 + $0x208] sm:$0xff]  ;;  %v187_v16 = vcombine.high %v185_v8, %v185_v8 }
  0x3b   :  { %598 = vmatpush3.msra.mxu0 %v93_v56  ;;  %633 = vmatpush3.msra.mxu1 %v125_v57  ;;  %v122_v7 = vld [vmem:[%s1103_s1 + $0x310] sm:$0xff]  ;;  %v121_v51 = vld [vmem:[%s1103_s1 + $0x308] sm:$0xff]  ;;  %v104_v12 = vld [vmem:[%s1103_s1 + $0x280] sm:$0xff] }
  0x3c   :  { %599 = vmatprep.subr.mxu0 %v108_v58  ;;  %634 = vmatprep.subr.mxu1 %v140_v59  ;;  %v136_v13 = vld [vmem:[%s1103_s1 + $0x380] sm:$0xff] }
  0x3d   :  { %600 = vmatpush3.msra.mxu0 %v92_v60  ;;  %635 = vmatpush3.msra.mxu1 %v124_v61  ;;  %v88_v15 = vld [vmem:[%s1103_s1 + $0x200] sm:$0xff] }
  0x3e   :  { %601 = vmatprep.subr.mxu0 %v107_v63  ;;  %636 = vmatprep.subr.mxu1 %v139_v0  ;;  %v120_v17 = vld [vmem:[%s1103_s1 + $0x300] sm:$0xff] }
  0x3f   :  { %602 = vmatpush3.msra.mxu0 %v91_v1  ;;  %637 = vmatpush3.msra.mxu1 %v123_v2  ;;  %v21_v33 = vld [vmem:[#allocation2] sm:$0x3] }
  0x40   :  { %603 = vmatprep.subr.mxu0 %v106_v3  ;;  %638 = vmatprep.subr.mxu1 %v138_v4  ;;  %v506_v36 = vld [vmem:[%s1104_s2] ss:$0 sm:$0xff] }
  0x41   :  { %604 = vmatpush3.msra.mxu0 %v90_v6  ;;  %639 = vmatpush3.msra.mxu1 %v122_v7 }
  0x42   :  { %605 = vmatprep.subr.mxu0 %v105_v9  ;;  %640 = vmatprep.subr.mxu1 %v137_v10 }
  0x43   :  { %606 = vmatpush3.msra.mxu0 %v89_v11  ;;  %641 = vmatpush3.msra.mxu1 %v121_v51 }
  0x44   :  { %607 = vmatprep.subr.mxu0 %v104_v12  ;;  %642 = vmatprep.subr.mxu1 %v136_v13 }
  0x45   :  { %608 = vmatpush3.msra.mxu0 %v88_v15  ;;  %400 = vmatprep.mubr.f32.mxu0 %v186_v14 }
  0x46   :  { %643 = vmatpush3.msra.mxu1 %v120_v17  ;;  %470 = vmatprep.mubr.f32.mxu1 %v187_v16 }
  0x47   :  { %401 = vmatmul.mubr.f32.vlgmr.msra.gmra.mxu0 %v178_v5  ;;  %471 = vmatmul.mubr.f32.vlgmr.msra.gmra.mxu1 %v185_v8 }
  0xe4   :  { %v539_v19 = vpop.f32.mrf.mxu0 }
  0xe5   :  { %v574_v20 = vpop.f32.mrf.mxu1 }
  0xe6   :  { %v540_v21 = vpop.f32.mrf.mxu0 }
  0xe7   :  { %v575_v22 = vpop.f32.mrf.mxu1  ;;  %v541_v23 = vadd.f32 %v540_v21, %v539_v19 }
  0xe8   :  { %v576_v24 = vadd.f32 %v575_v22, %v574_v20 }
  0xea   :  { %v333_v29 = vadd.f32 %v576_v24, %v541_v23 }
 0x107   :  { %v609_v25 = vpop.f32.mrf.mxu0  ;;  %v644_v26 = vpop.f32.mrf.mxu1 }
 0x109   :  { %v610_v27 = vpop.f32.mrf.mxu0  ;;  %v645_v28 = vpop.f32.mrf.mxu1 }
 0x10a   :  { %v611_v30 = vadd.f32 %v610_v27, %v609_v25  ;;  %v646_v32 = vadd.f32 %v645_v28, %v644_v26 }
 0x10c   :  { %v403_v31 = vadd.f32 %v611_v30, %v333_v29 }
 0x10e   :  { %v473_v34 = vadd.f32 %v646_v32, %v403_v31 }
 0x110   :  { %v476_v35 = vadd.f32 %v473_v34, %v21_v33 }
 0x112   :  { %478 = vst.msk [vmem:[#allocation2] sm:$0x3] %vm19_vm0, %v476_v35 }
 0x119   :  { %v482_v37 = vld [vmem:[#allocation2] sm:$0x3] }
 0x11a   :  { %v490_v38 = vadd.f32 %v506_v36, %v482_v37 }
 0x11c   :  { %491 = vst.msk [vmem:[#allocation2] sm:$0x3] %vm19_vm0, %v490_v38 }
 0x11d   :  { %663 = shalt.err (!%p660_p4)
}
 0x11e   :  { %501 = dma.vmem_to_hbm [thread:$0]  %s499_s29, 32, %s1105_s3, [#allocation3]  }
 0x11f   :  { %672 = dma.done.wait [#allocation3], 32  }
 0x120   :  { %673 = vsyncadd [#allocation3], 4294967264 }
 0x121   :  { %505 = vsyncpa [#allocation3], 1 }

</bundles_post_ra>
